<compile_context>
chip_gen: v7x
topology: tpu7x:2x2x1
jax: 0.10.0
libtpu: 0.0.40
codegen_flags: <defaults>
</compile_context>

<pallas_src>
import functools

import jax
import jax.numpy as jnp
from jax import lax
from jax.experimental import pallas as pl
from jax.experimental.pallas import tpu as pltpu

PATCH = 4          # router conv: kernel == stride == 4, no padding
NUM_CLASSES = 10   # MobileNetV2 CIFAR-10 head width
EXPERTS = 4        # config['experts']
C_PAD = 128        # classes padded to a full lane register (lane-dense out)


# ----------------------------------------------------------------------------
# Fused kernel, single invocation (no grid): router -> gating -> loss ->
# one all-expert MXU matmul -> combine -> masked softmax.
# ----------------------------------------------------------------------------
def _fused_moe_kernel(s_ref, wr_ref, br_ref, x_ref, we_ref, be_ref,
                      out_ref, sel0_ref, loss_ref,
                      *, num_patches, c_valid, b_valid, n_exp):
    # ---- router + gating (+ load-balance loss), all f32 ---------------------
    s = s_ref[...]                                        # (B_pad, K) f32
    w = wr_ref[...]                                       # (E, K)     f32
    b = br_ref[...]                                       # (1, E)     f32

    # Conv2d(3->E, k=4, s=4) + sum over both spatial dims. With stride ==
    # kernel and no padding the patches are disjoint, so the spatial sum of
    # the conv equals (patch-sums) @ W^T + P * bias.
    logits = lax.dot_general(
        s, w, (((1,), (1,)), ((), ())),
        preferred_element_type=jnp.float32) + num_patches * b        # (B_pad, E)

    # softmax over experts (dim=1)
    m = jnp.max(logits, axis=1, keepdims=True)
    ex = jnp.exp(logits - m)
    select = ex / jnp.sum(ex, axis=1, keepdims=True)      # (B_pad, E)

    # top1: gate = max prob, index = first argmax (torch.topk tie-break)
    gate = jnp.max(select, axis=1, keepdims=True)         # (B_pad, 1)
    e_iota = lax.broadcasted_iota(jnp.int32, select.shape, 1)
    index = jnp.min(jnp.where(select == gate, e_iota, n_exp),
                    axis=1, keepdims=True)                # (B_pad, 1) int32
    mask = (e_iota == index).astype(jnp.float32)          # one_hot(index, E)

    # padded batch rows must not contribute to the density means
    row = lax.broadcasted_iota(jnp.int32, select.shape, 0)
    rvalid = (row < b_valid).astype(jnp.float32)

    # loss = mean(density_proxy * density) * E^2 == sum(...) * E
    density = jnp.sum(mask * rvalid, axis=0, keepdims=True) / float(b_valid)
    density_proxy = jnp.sum(select * rvalid, axis=0, keepdims=True) / float(b_valid)
    loss_ref[...] = jnp.sum(density * density_proxy,
                            axis=1, keepdims=True) * float(n_exp)

    # mask_flat == 1 for one-hot top-1 routing, so combine = gate * mask.
    combine = gate * mask                                 # (B_pad, E) f32
    sel0_ref[...] = (combine != 0.0).astype(jnp.float32)

    # ---- all experts in ONE MXU pass: (B_pad, D) @ (D, E*128) ---------------
    # TODO(synk): MobileNetV2 expert body is not provided in the source
    # module; each expert is a per-expert linear classifier stand-in.
    # TODO(synk): at production scale use token-sorted dispatch via
    # PrefetchScalarGridSpec so only routed rows hit each expert.
    out_all = jnp.dot(x_ref[...], we_ref[...],
                      preferred_element_type=jnp.float32) + be_ref[...]
    # (B_pad, E*C_PAD) f32; combine weight zeroes non-routed (expert, row)
    # pairs, so no explicit dispatch multiply on x is needed.

    # output = einsum('ijk,jil->il', combine_tensor, expert_outputs):
    # weighted sum of static 128-lane slices (lane-aligned, no XLU work).
    acc = combine[:, 0:1] * out_all[:, 0:C_PAD]
    for e in range(1, n_exp):
        acc = acc + combine[:, e:e + 1] * out_all[:, e * C_PAD:(e + 1) * C_PAD]

    # ---- final masked softmax over valid classes; single lane-dense store ---
    lane = lax.broadcasted_iota(jnp.int32, acc.shape, 1)
    valid = lane < c_valid
    am = jnp.where(valid, acc, -jnp.inf)
    mx = jnp.max(am, axis=1, keepdims=True)
    exl = jnp.where(valid, jnp.exp(am - mx), 0.0)
    out_ref[...] = exl / jnp.sum(exl, axis=1, keepdims=True)


# ----------------------------------------------------------------------------
# One-time parameter packing (hoisted out of the forward path): flatten the
# router conv weight, pad expert classifiers to 128 lanes, pack all experts
# along the matmul N dimension, cast MXU operands to bf16.
# ----------------------------------------------------------------------------
def pack_params(params):
    w_r, b_r = params["router_w"], params["router_b"]      # (E,3,4,4), (E,)
    w_e, b_e = params["expert_w"], params["expert_b"]      # (E,D,C),   (E,C)
    E, Cin, kh, kw = w_r.shape
    D, C = w_e.shape[1], w_e.shape[2]
    wr_flat = w_r.reshape(E, Cin * kh * kw).astype(jnp.float32)      # (E, K)
    br = b_r.reshape(1, E).astype(jnp.float32)                       # (1, E)
    we_packed = (jnp.pad(w_e, ((0, 0), (0, 0), (0, C_PAD - C)))
                 .transpose(1, 0, 2)
                 .reshape(D, E * C_PAD)
                 .astype(jnp.bfloat16))                              # (D, E*128)
    be_packed = (jnp.pad(b_e, ((0, 0), (0, C_PAD - C)))
                 .reshape(1, E * C_PAD)
                 .astype(jnp.float32))                               # (1, E*128)
    return {"wr": wr_flat, "br": br, "we": we_packed, "be": be_packed}


# ----------------------------------------------------------------------------
# Forward wrapper: router patch-sums, batch padding to 8 sublanes, kernel call.
# ----------------------------------------------------------------------------
@functools.partial(jax.jit, static_argnames=("num_classes",))
def nonlinear_mixture_mobile(x, packed, *, num_classes=NUM_CLASSES):
    B, Cin, H, W = x.shape
    E = packed["br"].shape[1]
    K = packed["wr"].shape[1]
    D = packed["we"].shape[0]
    ph, pw = H // PATCH, W // PATCH
    P = ph * pw
    B_pad = max(8, -(-B // 8) * 8)          # sublane-aligned batch

    # Router only needs per-(c, kh, kw) sums over the disjoint 4x4 patch grid
    # (no full patch tensor / 6-D transpose is materialized).
    s = (x.reshape(B, Cin, ph, PATCH, pw, PATCH)
          .sum(axis=(2, 4)).reshape(B, K).astype(jnp.float32))
    x_flat = x.reshape(B, D).astype(jnp.bfloat16)
    if B_pad != B:
        s = jnp.pad(s, ((0, B_pad - B), (0, 0)))
        x_flat = jnp.pad(x_flat, ((0, B_pad - B), (0, 0)))

    kernel = functools.partial(_fused_moe_kernel,
                               num_patches=float(P), c_valid=num_classes,
                               b_valid=B, n_exp=E)

    # TODO(synk): on v7x with production-size B, add a "parallel" batch-tile
    # grid axis for the 2nd TensorCore and finish the loss reduction in the
    # wrapper (cross-tile density means).
    out_pad, sel0, loss = pl.pallas_call(
        kernel,
        out_shape=(jax.ShapeDtypeStruct((B_pad, C_PAD), jnp.float32),
                   jax.ShapeDtypeStruct((B_pad, E), jnp.float32),
                   jax.ShapeDtypeStruct((1, 1), jnp.float32)),
    )(s, packed["wr"], packed["br"], x_flat, packed["we"], packed["be"])

    return out_pad[:B, :num_classes], sel0[:B], loss[0, 0], 0


# ----------------------------------------------------------------------------
# Pure-JAX f32 reference (mirrors the PyTorch graph) for a correctness check.
# ----------------------------------------------------------------------------
def _reference(x, params):
    w_r, b_r = params["router_w"], params["router_b"]
    w_e, b_e = params["expert_w"], params["expert_b"]
    B = x.shape[0]
    E = w_r.shape[0]
    y = lax.conv_general_dilated(
        x, w_r, (PATCH, PATCH), "VALID",
        dimension_numbers=("NCHW", "OIHW", "NCHW")) + b_r[None, :, None, None]
    logits = y.sum(axis=(2, 3))
    select = jax.nn.softmax(logits, axis=1)
    gate = select.max(axis=1)
    index = select.argmax(axis=1)
    mask = jax.nn.one_hot(index, E)
    density = mask.mean(axis=0)
    density_proxy = select.mean(axis=0)
    loss = (density_proxy * density).mean() * float(E * E)
    mask_flat = mask.sum(axis=-1)
    combine = gate[:, None, None] * mask_flat[:, None, None] * mask[..., None]
    dispatch = (combine != 0).astype(combine.dtype)
    select0 = dispatch[..., 0]
    expert_inputs = jnp.einsum("bjkd,ben->ebjkd", x, dispatch)   # (E,B,3,H,W)
    outs = [expert_inputs[i].reshape(B, -1) @ w_e[i] + b_e[i] for i in range(E)]
    stacked = jnp.stack(outs)                                     # (E, B, C)
    out = jnp.einsum("ijk,jil->il", combine, stacked)
    out = jax.nn.softmax(out, axis=1)
    return out, select0, loss


if __name__ == "__main__":
    B, Cin, H, W = 2, 3, 16, 16
    E, C = EXPERTS, NUM_CLASSES
    D = Cin * H * W

    key = jax.random.PRNGKey(0)
    k_x, k_rw, k_rb, k_ew, k_eb = jax.random.split(key, 5)
    x = jax.random.normal(k_x, (B, Cin, H, W), jnp.float32)
    params = {
        "router_w": 0.1 * jax.random.normal(k_rw, (E, Cin, PATCH, PATCH),
                                            jnp.float32),
        "router_b": 0.1 * jax.random.normal(k_rb, (E,), jnp.float32),
        "expert_w": 0.02 * jax.random.normal(k_ew, (E, D, C), jnp.float32),
        "expert_b": 0.02 * jax.random.normal(k_eb, (E, C), jnp.float32),
    }

    packed = pack_params(params)                 # one-time pad/cast, not per call
    out, select0, loss, zero = nonlinear_mixture_mobile(x, packed)
    jax.block_until_ready((out, select0, loss))

    ref_out, ref_select0, ref_loss = _reference(x, params)
    # Expert matmul operands are bf16 in the kernel (f32 accumulation), so the
    # output check uses a correspondingly relaxed tolerance; the routing path
    # (select0, loss) is pure f32 and checked tightly.
    assert jnp.allclose(out, ref_out, rtol=3e-2, atol=3e-3), "output mismatch"
    assert jnp.allclose(select0, ref_select0), "select0 mismatch"
    assert jnp.allclose(loss, ref_loss, rtol=1e-4, atol=1e-6), "loss mismatch"
    assert zero == 0

    print("KERNEL_OK")
</pallas_src>

<mosaic_0001>
module attributes {stable_mosaic.version = 11 : i64} {
  func.func @_fused_moe_kernel(%arg0: memref<8x48xf32, #tpu.memory_space<vmem>>, %arg1: memref<4x48xf32, #tpu.memory_space<vmem>>, %arg2: memref<1x4xf32, #tpu.memory_space<vmem>>, %arg3: memref<8x768xbf16, #tpu.memory_space<vmem>>, %arg4: memref<768x512xbf16, #tpu.memory_space<vmem>>, %arg5: memref<1x512xf32, #tpu.memory_space<vmem>>, %arg6: memref<8x128xf32, #tpu.memory_space<vmem>>, %arg7: memref<8x4xf32, #tpu.memory_space<vmem>>, %arg8: memref<1x1xf32, #tpu.memory_space<vmem>>) attributes {dimension_semantics = [], scalar_prefetch = 0 : i64, scratch_operands = 0 : i64, tpu.core_type = #tpu.core_type<tc>} {
    %c0 = arith.constant 0 : index
    %c0_0 = arith.constant 0 : index
    %0 = vector.load %arg0[%c0, %c0_0] : memref<8x48xf32, #tpu.memory_space<vmem>>, vector<8x48xf32>
    %c0_1 = arith.constant 0 : index
    %c0_2 = arith.constant 0 : index
    %1 = vector.load %arg1[%c0_1, %c0_2] : memref<4x48xf32, #tpu.memory_space<vmem>>, vector<4x48xf32>
    %c0_3 = arith.constant 0 : index
    %c0_4 = arith.constant 0 : index
    %2 = vector.load %arg2[%c0_3, %c0_4] : memref<1x4xf32, #tpu.memory_space<vmem>>, vector<1x4xf32>
    %cst = arith.constant dense<0.000000e+00> : vector<8x4xf32>
    %3 = tpu.matmul %0, %1, %cst {dimension_numbers = #tpu.dot_dimension_numbers<[1], [1], [0], [0], [0, 0, 1, 0], [], []>} : vector<8x48xf32>, vector<4x48xf32>, vector<8x4xf32> -> vector<8x4xf32>
    %cst_5 = arith.constant 1.600000e+01 : f32
    %4 = vector.broadcast %cst_5 : f32 to vector<1x4xf32>
    %5 = arith.mulf %4, %2 : vector<1x4xf32>
    %6 = vector.broadcast %5 : vector<1x4xf32> to vector<8x4xf32>
    %7 = arith.addf %3, %6 : vector<8x4xf32>
    %cst_6 = arith.constant dense<0xFF800000> : vector<8xf32>
    %8 = vector.multi_reduction <maximumf>, %7, %cst_6 [1] : vector<8x4xf32> to vector<8xf32>
    %9 = vector.shape_cast %8 : vector<8xf32> to vector<8x1xf32>
    %10 = vector.broadcast %9 : vector<8x1xf32> to vector<8x4xf32>
    %11 = arith.subf %7, %10 : vector<8x4xf32>
    %12 = math.exp %11 : vector<8x4xf32>
    %cst_7 = arith.constant dense<0.000000e+00> : vector<8xf32>
    %13 = vector.multi_reduction <add>, %12, %cst_7 [1] : vector<8x4xf32> to vector<8xf32>
    %14 = vector.shape_cast %13 : vector<8xf32> to vector<8x1xf32>
    %15 = vector.broadcast %14 : vector<8x1xf32> to vector<8x4xf32>
    %16 = arith.divf %12, %15 : vector<8x4xf32>
    %cst_8 = arith.constant dense<0xFF800000> : vector<8xf32>
    %17 = vector.multi_reduction <maximumf>, %16, %cst_8 [1] : vector<8x4xf32> to vector<8xf32>
    %18 = vector.shape_cast %17 : vector<8xf32> to vector<8x1xf32>
    %19 = tpu.iota {dimensions = array<i32: 1>} : vector<8x4xi32>
    %20 = vector.broadcast %18 : vector<8x1xf32> to vector<8x4xf32>
    %21 = arith.cmpf oeq, %16, %20 : vector<8x4xf32>
    %c4_i32 = arith.constant 4 : i32
    %22 = vector.broadcast %c4_i32 : i32 to vector<8x4xi32>
    %23 = arith.select %21, %19, %22 : vector<8x4xi1>, vector<8x4xi32>
    %cst_9 = arith.constant dense<2147483647> : vector<8xi32>
    %24 = vector.multi_reduction <minsi>, %23, %cst_9 [1] : vector<8x4xi32> to vector<8xi32>
    %25 = vector.shape_cast %24 : vector<8xi32> to vector<8x1xi32>
    %26 = vector.broadcast %25 : vector<8x1xi32> to vector<8x4xi32>
    %27 = arith.cmpi eq, %19, %26 : vector<8x4xi32>
    %28 = arith.extui %27 : vector<8x4xi1> to vector<8x4xi32>
    %29 = arith.sitofp %28 : vector<8x4xi32> to vector<8x4xf32>
    %30 = tpu.iota {dimensions = array<i32: 0>} : vector<8x4xi32>
    %c2_i32 = arith.constant 2 : i32
    %31 = vector.broadcast %c2_i32 : i32 to vector<8x4xi32>
    %32 = arith.cmpi slt, %30, %31 : vector<8x4xi32>
    %33 = arith.extui %32 : vector<8x4xi1> to vector<8x4xi32>
    %34 = arith.sitofp %33 : vector<8x4xi32> to vector<8x4xf32>
    %35 = arith.mulf %29, %34 : vector<8x4xf32>
    %cst_10 = arith.constant dense<0.000000e+00> : vector<4xf32>
    %36 = vector.multi_reduction <add>, %35, %cst_10 [0] : vector<8x4xf32> to vector<4xf32>
    %37 = vector.shape_cast %36 : vector<4xf32> to vector<1x4xf32>
    %cst_11 = arith.constant 2.000000e+00 : f32
    %38 = vector.broadcast %cst_11 : f32 to vector<1x4xf32>
    %39 = arith.divf %37, %38 : vector<1x4xf32>
    %40 = arith.mulf %16, %34 : vector<8x4xf32>
    %cst_12 = arith.constant dense<0.000000e+00> : vector<4xf32>
    %41 = vector.multi_reduction <add>, %40, %cst_12 [0] : vector<8x4xf32> to vector<4xf32>
    %42 = vector.shape_cast %41 : vector<4xf32> to vector<1x4xf32>
    %cst_13 = arith.constant 2.000000e+00 : f32
    %43 = vector.broadcast %cst_13 : f32 to vector<1x4xf32>
    %44 = arith.divf %42, %43 : vector<1x4xf32>
    %45 = arith.mulf %39, %44 : vector<1x4xf32>
    %cst_14 = arith.constant dense<0.000000e+00> : vector<1xf32>
    %46 = vector.multi_reduction <add>, %45, %cst_14 [1] : vector<1x4xf32> to vector<1xf32>
    %47 = vector.shape_cast %46 : vector<1xf32> to vector<1x1xf32>
    %cst_15 = arith.constant 4.000000e+00 : f32
    %48 = vector.broadcast %cst_15 : f32 to vector<1x1xf32>
    %49 = arith.mulf %47, %48 : vector<1x1xf32>
    %c0_16 = arith.constant 0 : index
    %c0_17 = arith.constant 0 : index
    %50 = vector.load %arg8[%c0_16, %c0_17] : memref<1x1xf32, #tpu.memory_space<vmem>>, vector<1x1xf32>
    tpu.vector_store %arg8[%c0_16, %c0_17], %49 {strides = array<i32>} : memref<1x1xf32, #tpu.memory_space<vmem>>, vector<1x1xf32>,
    %51 = vector.broadcast %18 : vector<8x1xf32> to vector<8x4xf32>
    %52 = arith.mulf %51, %29 : vector<8x4xf32>
    %cst_18 = arith.constant 0.000000e+00 : f32
    %53 = vector.broadcast %cst_18 : f32 to vector<8x4xf32>
    %54 = arith.cmpf one, %52, %53 : vector<8x4xf32>
    %55 = arith.extui %54 : vector<8x4xi1> to vector<8x4xi32>
    %56 = arith.sitofp %55 : vector<8x4xi32> to vector<8x4xf32>
    %c0_19 = arith.constant 0 : index
    %c0_20 = arith.constant 0 : index
    %57 = vector.load %arg7[%c0_19, %c0_20] : memref<8x4xf32, #tpu.memory_space<vmem>>, vector<8x4xf32>
    tpu.vector_store %arg7[%c0_19, %c0_20], %56 {strides = array<i32>} : memref<8x4xf32, #tpu.memory_space<vmem>>, vector<8x4xf32>,
    %c0_21 = arith.constant 0 : index
    %c0_22 = arith.constant 0 : index
    %58 = vector.load %arg3[%c0_21, %c0_22] : memref<8x768xbf16, #tpu.memory_space<vmem>>, vector<8x768xbf16>
    %c0_23 = arith.constant 0 : index
    %c0_24 = arith.constant 0 : index
    %59 = vector.load %arg4[%c0_23, %c0_24] : memref<768x512xbf16, #tpu.memory_space<vmem>>, vector<768x512xbf16>
    %cst_25 = arith.constant dense<0.000000e+00> : vector<8x512xf32>
    %60 = tpu.matmul %58, %59, %cst_25 {dimension_numbers = #tpu.dot_dimension_numbers<[1], [0], [0], [1], [0, 0, 1, 1], [], []>} : vector<8x768xbf16>, vector<768x512xbf16>, vector<8x512xf32> -> vector<8x512xf32>
    %c0_26 = arith.constant 0 : index
    %c0_27 = arith.constant 0 : index
    %61 = vector.load %arg5[%c0_26, %c0_27] : memref<1x512xf32, #tpu.memory_space<vmem>>, vector<1x512xf32>
    %62 = vector.broadcast %61 : vector<1x512xf32> to vector<8x512xf32>
    %63 = arith.addf %60, %62 : vector<8x512xf32>
    %64 = vector.extract_strided_slice %52 {offsets = [0, 0], sizes = [8, 1], strides = [1, 1]} : vector<8x4xf32> to vector<8x1xf32>
    %65 = vector.extract_strided_slice %63 {offsets = [0, 0], sizes = [8, 128], strides = [1, 1]} : vector<8x512xf32> to vector<8x128xf32>
    %66 = vector.broadcast %64 : vector<8x1xf32> to vector<8x128xf32>
    %67 = arith.mulf %66, %65 : vector<8x128xf32>
    %68 = vector.extract_strided_slice %52 {offsets = [0, 1], sizes = [8, 1], strides = [1, 1]} : vector<8x4xf32> to vector<8x1xf32>
    %69 = vector.extract_strided_slice %63 {offsets = [0, 128], sizes = [8, 128], strides = [1, 1]} : vector<8x512xf32> to vector<8x128xf32>
    %70 = vector.broadcast %68 : vector<8x1xf32> to vector<8x128xf32>
    %71 = arith.mulf %70, %69 : vector<8x128xf32>
    %72 = arith.addf %67, %71 : vector<8x128xf32>
    %73 = vector.extract_strided_slice %52 {offsets = [0, 2], sizes = [8, 1], strides = [1, 1]} : vector<8x4xf32> to vector<8x1xf32>
    %74 = vector.extract_strided_slice %63 {offsets = [0, 256], sizes = [8, 128], strides = [1, 1]} : vector<8x512xf32> to vector<8x128xf32>
    %75 = vector.broadcast %73 : vector<8x1xf32> to vector<8x128xf32>
    %76 = arith.mulf %75, %74 : vector<8x128xf32>
    %77 = arith.addf %72, %76 : vector<8x128xf32>
    %78 = vector.extract_strided_slice %52 {offsets = [0, 3], sizes = [8, 1], strides = [1, 1]} : vector<8x4xf32> to vector<8x1xf32>
    %79 = vector.extract_strided_slice %63 {offsets = [0, 384], sizes = [8, 128], strides = [1, 1]} : vector<8x512xf32> to vector<8x128xf32>
    %80 = vector.broadcast %78 : vector<8x1xf32> to vector<8x128xf32>
    %81 = arith.mulf %80, %79 : vector<8x128xf32>
    %82 = arith.addf %77, %81 : vector<8x128xf32>
    %83 = tpu.iota {dimensions = array<i32: 1>} : vector<8x128xi32>
    %c10_i32 = arith.constant 10 : i32
    %84 = vector.broadcast %c10_i32 : i32 to vector<8x128xi32>
    %85 = arith.cmpi slt, %83, %84 : vector<8x128xi32>
    %cst_28 = arith.constant 0xFF800000 : f32
    %86 = vector.broadcast %cst_28 : f32 to vector<8x128xf32>
    %87 = arith.select %85, %82, %86 : vector<8x128xi1>, vector<8x128xf32>
    %cst_29 = arith.constant dense<0xFF800000> : vector<8xf32>
    %88 = vector.multi_reduction <maximumf>, %87, %cst_29 [1] : vector<8x128xf32> to vector<8xf32>
    %89 = vector.shape_cast %88 : vector<8xf32> to vector<8x1xf32>
    %90 = vector.broadcast %89 : vector<8x1xf32> to vector<8x128xf32>
    %91 = arith.subf %87, %90 : vector<8x128xf32>
    %92 = math.exp %91 : vector<8x128xf32>
    %cst_30 = arith.constant 0.000000e+00 : f32
    %93 = vector.broadcast %cst_30 : f32 to vector<8x128xf32>
    %94 = arith.select %85, %92, %93 : vector<8x128xi1>, vector<8x128xf32>
    %cst_31 = arith.constant dense<0.000000e+00> : vector<8xf32>
    %95 = vector.multi_reduction <add>, %94, %cst_31 [1] : vector<8x128xf32> to vector<8xf32>
    %96 = vector.shape_cast %95 : vector<8xf32> to vector<8x1xf32>
    %97 = vector.broadcast %96 : vector<8x1xf32> to vector<8x128xf32>
    %98 = arith.divf %94, %97 : vector<8x128xf32>
    %c0_32 = arith.constant 0 : index
    %c0_33 = arith.constant 0 : index
    %99 = vector.load %arg6[%c0_32, %c0_33] : memref<8x128xf32, #tpu.memory_space<vmem>>, vector<8x128xf32>
    tpu.vector_store %arg6[%c0_32, %c0_33], %98 {strides = array<i32>} : memref<8x128xf32, #tpu.memory_space<vmem>>, vector<8x128xf32>,
    return
  }
}

</mosaic_0001>

<bundles_post_ra>
// kernel: nonlinear_mixture_mobile.1
= control target key start
LH: loop header
LB: loop body
LE: loop exit
PB: predicated region body
PF: predicated region fallthrough
CT: control target
= control target key end

     0   :  { %14 = vsyncpa [#allocation3], 0  ;;  %s2462_s0 = inlined_call_operand.vmem [shape: f32[8,48], index: 0, kind: input, shape index: {}]   ;;  %s2463_s1 = inlined_call_operand.vmem [shape: f32[4,48], index: 1, kind: input, shape index: {}]   ;;  %s2464_s2 = inlined_call_operand.vmem [shape: f32[1,4], index: 2, kind: input, shape index: {}]   ;;  %s2465_s3 = inlined_call_operand.vmem [shape: bf16[8,768], index: 3, kind: input, shape index: {}]   ;;  %s2466_s4 = inlined_call_operand.hbm [shape: bf16[768,512], index: 4, kind: input, shape index: {}]   ;;  %s2467_s5 = inlined_call_operand.vmem [shape: f32[1,512], index: 5, kind: input, shape index: {}]   ;;  %s2468_s6 = inlined_call_operand.vmem [shape: f32[8,128], index: 6, kind: output, shape index: {0}]   ;;  %s2469_s7 = inlined_call_operand.vmem [shape: f32[8,4], index: 7, kind: output, shape index: {1}]   ;;  %s2470_s8 = inlined_call_operand.hbm [shape: f32[1,1], index: 8, kind: output, shape index: {2}]  }
   0x1   :  { %15 = vsyncpa [#allocation4], 0  ;;  %s2300_s27 = smov [#allocation2]   ;;  %s2252_s9 = scalar_lea.hbm %s2466_s4, 24576 }
   0x2   :  { %s29_s28 = sshll.u32 %s2300_s27, 4  ;;  %p2253_p0 = scmp.ne.s32.totalorder %s2466_s4, %s2252_s9  ;;  %s30_s28 = int_to_ptr.vmem [resolvable:$true] %s29_s28 }
   0x3   :  { %p2256_p1 = scmp.lt.u32.totalorder %s2252_s9, %s2466_s4 }
   0x5   :  { %p2258_p2 = pnand %p2256_p1, %p2253_p0 }
   0x7   :  { %2261 = shalt.err (!%p2258_p2)
}
   0x8   :  { %s2262_s14 = scalar_lea.vmem %s30_s28, 24576  ;;  %p2267_p4 = scmp.lt.s32.totalorder %s30_s28, %s30_s28 }
   0x9   :  { %p2263_p3 = scmp.ne.s32.totalorder %s30_s28, %s2262_s14  ;;  %p2268_p5 = scmp.lt.s32.totalorder %s2262_s14, %s2262_s14 }
   0xb   :  { %p2269_p6 = por %p2268_p5, %p2267_p4 }
   0xd   :  { %p2270_p7 = pnand %p2269_p6, %p2263_p3 }
   0xf   :  { %2273 = shalt.err (!%p2270_p7)
}
  0x10   :  { %s2301_s15 = smov 256   ;;  %s2302_s16 = smov 16  }
  0x11   :  { %35 = dma.hbm_to_vmem [thread:$0]  %s2466_s4, 24576, %s30_s28, [#allocation3], %s2301_s15, %s2301_s15, %s2302_s16  }
  0x12   :  { %2296 = dma.done.wait [#allocation3], 24576  }
  0x13   :  { %2297 = vsyncadd [#allocation3], 4294942720  ;;  %v2303_v0 = vmov 0.0   ;;  %vm2304_vm0 = vmmov 0   ;;  %vm51_vm1 = vcmask 392192   ;;  %v41_v2 = vld [vmem:[%s2462_s0] sm:$0xff]  ;;  %v46_v3 = vlaneseq }
  0x14   :  { %1910 = vmatprep.subr.mxu0 %v2303_v0  ;;  %1912 = vmatprep.mubr.msk.f32.mxu0 %vm2304_vm0, %v2303_v0  ;;  %v42_v1 = vld [vmem:[%s2463_s1] sm:$0xf]  ;;  %vm128_vm2 = vcmask 31744   ;;  %v1950_v18 = vld [vmem:[#allocation2 + $0x4] ss:$16 sps:$4 sm:$0xff]   ;;  %vm194_vm9 = vcmask 0  }
  0x15   :  { %1911 = vmatpush3.xpose.msk.msra.mxu0 %vm51_vm1, %v42_v1  ;;  %v2376_v4 = vshrl.u32 %v46_v3, 7  ;;  %v43_v5 = vld [vmem:[%s2464_s2] sm:$0x1]  ;;  %v1953_v20 = vld [vmem:[#allocation2 + $0x8] ss:$16 sps:$4 sm:$0xff]   ;;  %1399 = vmatprep.subr.bf16.mxu1 %v1950_v18 }
  0x16   :  { %v44_v6 = vmul.f32 16.0, %v43_v5  ;;  %v1952_v19 = vld [vmem:[#allocation2] ss:$16 sps:$4 sm:$0xff]   ;;  %v1955_v21 = vld [vmem:[#allocation2 + $0xc] ss:$16 sps:$4 sm:$0xff]  }
  0x17   :  { %v48_v7 = vsub.s32 0, %v2376_v4  ;;  %v1956_v22 = vld [vmem:[#allocation2 + $0x24] ss:$16 sps:$4 sm:$0xff]   ;;  %v1961_v23 = vld [vmem:[#allocation2 + $0x2c] ss:$16 sps:$4 sm:$0xff]   ;;  %1400 = vmatpush1.bf16.msra.mxu1 %v1952_v19  ;;  %1522 = vmatprep.subr.bf16.mxu0 %v1955_v21  ;;  %vm167_vm7 = vcmp.lt.s32.totalorder %v2376_v4, 2 }
  0x18   :  { %1913 = vmatmul.mubr.msk.f32.vlgmr.msra.gmra.mrb[0].mxu0 %vm51_vm1, %v41_v2  ;;  %v1958_v24 = vld [vmem:[#allocation2 + $0x20] ss:$16 sps:$4 sm:$0xff]   ;;  %1401 = vmatprep.subr.bf16.mxu1 %v1956_v22  ;;  %v1959_v25 = vld [vmem:[#allocation2 + $0x28] ss:$16 sps:$4 sm:$0xff]   ;;  %v1962_v26 = vld [vmem:[#allocation2 + $0x44] ss:$16 sps:$4 sm:$0xff]  }
  0x19   :  { %v49_v8 = vrot.slane %v44_v6, %v48_v7  ;;  %1523 = vmatpush1.bf16.msra.mxu0 %v1953_v20  ;;  %v1967_v27 = vld [vmem:[#allocation2 + $0x4c] ss:$16 sps:$4 sm:$0xff]   ;;  %v1964_v28 = vld [vmem:[#allocation2 + $0x40] ss:$16 sps:$4 sm:$0xff]   ;;  %v1965_v29 = vld [vmem:[#allocation2 + $0x48] ss:$16 sps:$4 sm:$0xff]  }
  0x1a   :  { %1524 = vmatprep.subr.bf16.mxu0 %v1961_v23  ;;  %v1968_v30 = vld [vmem:[#allocation2 + $0x64] ss:$16 sps:$4 sm:$0xff]   ;;  %v1973_v31 = vld [vmem:[#allocation2 + $0x6c] ss:$16 sps:$4 sm:$0xff]   ;;  %v1970_v32 = vld [vmem:[#allocation2 + $0x60] ss:$16 sps:$4 sm:$0xff]  }
  0x1b   :  { %1402 = vmatpush1.bf16.msra.mxu1 %v1958_v24  ;;  %v1971_v33 = vld [vmem:[#allocation2 + $0x68] ss:$16 sps:$4 sm:$0xff]   ;;  %v1974_v34 = vld [vmem:[#allocation2 + $0x84] ss:$16 sps:$4 sm:$0xff]   ;;  %v1979_v35 = vld [vmem:[#allocation2 + $0x8c] ss:$16 sps:$4 sm:$0xff]  }
  0x1c   :  { %1403 = vmatprep.subr.bf16.mxu1 %v1962_v26  ;;  %v1976_v36 = vld [vmem:[#allocation2 + $0x80] ss:$16 sps:$4 sm:$0xff]   ;;  %v1977_v37 = vld [vmem:[#allocation2 + $0x88] ss:$16 sps:$4 sm:$0xff]   ;;  %v1980_v38 = vld [vmem:[#allocation2 + $0xa4] ss:$16 sps:$4 sm:$0xff]  }
  0x1d   :  { %1525 = vmatpush1.bf16.msra.mxu0 %v1959_v25  ;;  %v1985_v39 = vld [vmem:[#allocation2 + $0xac] ss:$16 sps:$4 sm:$0xff]   ;;  %v1982_v40 = vld [vmem:[#allocation2 + $0xa0] ss:$16 sps:$4 sm:$0xff]   ;;  %v1983_v41 = vld [vmem:[#allocation2 + $0xa8] ss:$16 sps:$4 sm:$0xff]  }
  0x1e   :  { %1526 = vmatprep.subr.bf16.mxu0 %v1967_v27  ;;  %v1986_v42 = vld [vmem:[#allocation2 + $0xc4] ss:$16 sps:$4 sm:$0xff]   ;;  %v1991_v43 = vld [vmem:[#allocation2 + $0xcc] ss:$16 sps:$4 sm:$0xff]   ;;  %v1988_v46 = vld [vmem:[#allocation2 + $0xc0] ss:$16 sps:$4 sm:$0xff]  }
  0x1f   :  { %1404 = vmatpush1.bf16.msra.mxu1 %v1964_v28  ;;  %v2392_v44 = vld [vmem:[%s2465_s3] sm:$0xff]  ;;  %v1989_v47 = vld [vmem:[#allocation2 + $0xc8] ss:$16 sps:$4 sm:$0xff]   ;;  %v1997_v49 = vld [vmem:[#allocation2 + $0xec] ss:$16 sps:$4 sm:$0xff]  }
  0x20   :  { %1405 = vmatprep.subr.bf16.mxu1 %v1968_v30  ;;  %v1711_v45 = vcombine.high %v2392_v44, %v2392_v44  ;;  %v1992_v48 = vld [vmem:[#allocation2 + $0xe4] ss:$16 sps:$4 sm:$0xff]   ;;  %v1994_v50 = vld [vmem:[#allocation2 + $0xe0] ss:$16 sps:$4 sm:$0xff]   ;;  %v1995_v51 = vld [vmem:[#allocation2 + $0xe8] ss:$16 sps:$4 sm:$0xff]   ;;  %v1710_v27 = vcombine.low %v2392_v44, %v2392_v44 }
  0x21   :  { %1527 = vmatpush1.bf16.msra.mxu0 %v1965_v29  ;;  %v1998_v52 = vld [vmem:[#allocation2 + $0x104] ss:$16 sps:$4 sm:$0xff]   ;;  %v2003_v53 = vld [vmem:[#allocation2 + $0x10c] ss:$16 sps:$4 sm:$0xff]   ;;  %v2000_v54 = vld [vmem:[#allocation2 + $0x100] ss:$16 sps:$4 sm:$0xff]  }
  0x22   :  { %1528 = vmatprep.subr.bf16.mxu0 %v1973_v31  ;;  %1431 = vmatprep.mubr.bf16.mxu1 %v1711_v45  ;;  %v2001_v55 = vld [vmem:[#allocation2 + $0x108] ss:$16 sps:$4 sm:$0xff]   ;;  %v2004_v56 = vld [vmem:[#allocation2 + $0x124] ss:$16 sps:$4 sm:$0xff]   ;;  %v2009_v57 = vld [vmem:[#allocation2 + $0x12c] ss:$16 sps:$4 sm:$0xff]  }
  0x23   :  { %1406 = vmatpush1.bf16.msra.mxu1 %v1970_v32  ;;  %1554 = vmatprep.mubr.bf16.mxu0 %v1711_v45  ;;  %v2006_v58 = vld [vmem:[#allocation2 + $0x120] ss:$16 sps:$4 sm:$0xff]   ;;  %v2007_v59 = vld [vmem:[#allocation2 + $0x128] ss:$16 sps:$4 sm:$0xff]   ;;  %v2010_v60 = vld [vmem:[#allocation2 + $0x144] ss:$16 sps:$4 sm:$0xff]  }
  0x24   :  { %1407 = vmatprep.subr.bf16.mxu1 %v1974_v34  ;;  %v2015_v61 = vld [vmem:[#allocation2 + $0x14c] ss:$16 sps:$4 sm:$0xff]   ;;  %v2012_v62 = vld [vmem:[#allocation2 + $0x140] ss:$16 sps:$4 sm:$0xff]   ;;  %v2013_v63 = vld [vmem:[#allocation2 + $0x148] ss:$16 sps:$4 sm:$0xff]  }
  0x25   :  { %1529 = vmatpush1.bf16.msra.mxu0 %v1971_v33  ;;  %v2016_v1 = vld [vmem:[#allocation2 + $0x164] ss:$16 sps:$4 sm:$0xff]   ;;  %v2021_v2 = vld [vmem:[#allocation2 + $0x16c] ss:$16 sps:$4 sm:$0xff]   ;;  %v2018_v5 = vld [vmem:[#allocation2 + $0x160] ss:$16 sps:$4 sm:$0xff]  }
  0x26   :  { %1530 = vmatprep.subr.bf16.mxu0 %v1979_v35  ;;  %v2019_v6 = vld [vmem:[#allocation2 + $0x168] ss:$16 sps:$4 sm:$0xff]   ;;  %v2039_v18 = vld [vmem:[#allocation2 + $0x1cc] ss:$16 sps:$4 sm:$0xff]   ;;  %v2036_v19 = vld [vmem:[#allocation2 + $0x1c0] ss:$16 sps:$4 sm:$0xff]  }
  0x27   :  { %1408 = vmatpush1.bf16.msra.mxu1 %v1976_v36  ;;  %v2037_v20 = vld [vmem:[#allocation2 + $0x1c8] ss:$16 sps:$4 sm:$0xff]   ;;  %v2040_v21 = vld [vmem:[#allocation2 + $0x1e4] ss:$16 sps:$4 sm:$0xff]   ;;  %v2045_v22 = vld [vmem:[#allocation2 + $0x1ec] ss:$16 sps:$4 sm:$0xff]  }
  0x28   :  { %1409 = vmatprep.subr.bf16.mxu1 %v1980_v38  ;;  %v2042_v23 = vld [vmem:[#allocation2 + $0x1e0] ss:$16 sps:$4 sm:$0xff]   ;;  %v2043_v24 = vld [vmem:[#allocation2 + $0x1e8] ss:$16 sps:$4 sm:$0xff]   ;;  %v2050_v25 = vld [vmem:[#allocation2 + $0x204] ss:$16 sps:$4 sm:$0xff]  }
  0x29   :  { %1531 = vmatpush1.bf16.msra.mxu0 %v1977_v37  ;;  %v2053_v26 = vld [vmem:[#allocation2 + $0x20c] ss:$16 sps:$4 sm:$0xff]   ;;  %v2048_v28 = vld [vmem:[#allocation2 + $0x200] ss:$16 sps:$4 sm:$0xff]   ;;  %v2051_v29 = vld [vmem:[#allocation2 + $0x208] ss:$16 sps:$4 sm:$0xff]  }
  0x2a   :  { %1532 = vmatprep.subr.bf16.mxu0 %v1985_v39  ;;  %v2056_v30 = vld [vmem:[#allocation2 + $0x224] ss:$16 sps:$4 sm:$0xff]   ;;  %v2059_v31 = vld [vmem:[#allocation2 + $0x22c] ss:$16 sps:$4 sm:$0xff]   ;;  %v2054_v32 = vld [vmem:[#allocation2 + $0x220] ss:$16 sps:$4 sm:$0xff]  }
  0x2b   :  { %1410 = vmatpush1.bf16.msra.mxu1 %v1982_v40  ;;  %v2057_v33 = vld [vmem:[#allocation2 + $0x228] ss:$16 sps:$4 sm:$0xff]   ;;  %v2062_v34 = vld [vmem:[#allocation2 + $0x244] ss:$16 sps:$4 sm:$0xff]   ;;  %v2065_v35 = vld [vmem:[#allocation2 + $0x24c] ss:$16 sps:$4 sm:$0xff]  }
  0x2c   :  { %1411 = vmatprep.subr.bf16.mxu1 %v1986_v42  ;;  %v2060_v36 = vld [vmem:[#allocation2 + $0x240] ss:$16 sps:$4 sm:$0xff]   ;;  %v2063_v37 = vld [vmem:[#allocation2 + $0x248] ss:$16 sps:$4 sm:$0xff]   ;;  %v2068_v38 = vld [vmem:[#allocation2 + $0x264] ss:$16 sps:$4 sm:$0xff]  }
  0x2d   :  { %1533 = vmatpush1.bf16.msra.mxu0 %v1983_v41  ;;  %v2071_v39 = vld [vmem:[#allocation2 + $0x26c] ss:$16 sps:$4 sm:$0xff]   ;;  %v2066_v40 = vld [vmem:[#allocation2 + $0x260] ss:$16 sps:$4 sm:$0xff]   ;;  %v2069_v41 = vld [vmem:[#allocation2 + $0x268] ss:$16 sps:$4 sm:$0xff]  }
  0x2e   :  { %1534 = vmatprep.subr.bf16.mxu0 %v1991_v43  ;;  %v2074_v42 = vld [vmem:[#allocation2 + $0x284] ss:$16 sps:$4 sm:$0xff]   ;;  %v2077_v43 = vld [vmem:[#allocation2 + $0x28c] ss:$16 sps:$4 sm:$0xff]   ;;  %v2072_v44 = vld [vmem:[#allocation2 + $0x280] ss:$16 sps:$4 sm:$0xff]  }
  0x2f   :  { %1412 = vmatpush1.bf16.msra.mxu1 %v1988_v46  ;;  %v2075_v45 = vld [vmem:[#allocation2 + $0x288] ss:$16 sps:$4 sm:$0xff]   ;;  %v2080_v46 = vld [vmem:[#allocation2 + $0x2a4] ss:$16 sps:$4 sm:$0xff]  }
  0x30   :  { %1413 = vmatprep.subr.bf16.mxu1 %v1992_v48  ;;  %v2078_v48 = vld [vmem:[#allocation2 + $0x2a0] ss:$16 sps:$4 sm:$0xff]  }
  0x31   :  { %1535 = vmatpush1.bf16.msra.mxu0 %v1989_v47  ;;  %v2083_v47 = vld [vmem:[#allocation2 + $0x2ac] ss:$16 sps:$4 sm:$0xff]  }
  0x32   :  { %1536 = vmatprep.subr.bf16.mxu0 %v1997_v49  ;;  %v2081_v49 = vld [vmem:[#allocation2 + $0x2a8] ss:$16 sps:$4 sm:$0xff]  }
  0x33   :  { %1414 = vmatpush1.bf16.msra.mxu1 %v1994_v50  ;;  %v2086_v50 = vld [vmem:[#allocation2 + $0x2c4] ss:$16 sps:$4 sm:$0xff]  }
  0x34   :  { %1415 = vmatprep.subr.bf16.mxu1 %v1998_v52  ;;  %v2084_v52 = vld [vmem:[#allocation2 + $0x2c0] ss:$16 sps:$4 sm:$0xff]  }
  0x35   :  { %1537 = vmatpush1.bf16.msra.mxu0 %v1995_v51  ;;  %v2089_v51 = vld [vmem:[#allocation2 + $0x2cc] ss:$16 sps:$4 sm:$0xff]  }
  0x36   :  { %1538 = vmatprep.subr.bf16.mxu0 %v2003_v53  ;;  %v2087_v53 = vld [vmem:[#allocation2 + $0x2c8] ss:$16 sps:$4 sm:$0xff]  }
  0x37   :  { %1416 = vmatpush1.bf16.msra.mxu1 %v2000_v54  ;;  %v2092_v54 = vld [vmem:[#allocation2 + $0x2e4] ss:$16 sps:$4 sm:$0xff]  }
  0x38   :  { %1417 = vmatprep.subr.bf16.mxu1 %v2004_v56  ;;  %v2090_v56 = vld [vmem:[#allocation2 + $0x2e0] ss:$16 sps:$4 sm:$0xff]  }
  0x39   :  { %1539 = vmatpush1.bf16.msra.mxu0 %v2001_v55  ;;  %v2095_v55 = vld [vmem:[#allocation2 + $0x2ec] ss:$16 sps:$4 sm:$0xff]  }
  0x3a   :  { %1540 = vmatprep.subr.bf16.mxu0 %v2009_v57  ;;  %v2093_v57 = vld [vmem:[#allocation2 + $0x2e8] ss:$16 sps:$4 sm:$0xff]  }
  0x3b   :  { %1418 = vmatpush1.bf16.msra.mxu1 %v2006_v58  ;;  %v2098_v58 = vld [vmem:[#allocation2 + $0x304] ss:$16 sps:$4 sm:$0xff]  }
  0x3c   :  { %1419 = vmatprep.subr.bf16.mxu1 %v2010_v60  ;;  %v2096_v60 = vld [vmem:[#allocation2 + $0x300] ss:$16 sps:$4 sm:$0xff]  }
  0x3d   :  { %1541 = vmatpush1.bf16.msra.mxu0 %v2007_v59  ;;  %v2101_v59 = vld [vmem:[#allocation2 + $0x30c] ss:$16 sps:$4 sm:$0xff]  }
  0x3e   :  { %1542 = vmatprep.subr.bf16.mxu0 %v2015_v61  ;;  %v2099_v61 = vld [vmem:[#allocation2 + $0x308] ss:$16 sps:$4 sm:$0xff]  }
  0x3f   :  { %1420 = vmatpush1.bf16.msra.mxu1 %v2012_v62  ;;  %v2104_v62 = vld [vmem:[#allocation2 + $0x324] ss:$16 sps:$4 sm:$0xff]  }
  0x40   :  { %1421 = vmatprep.subr.bf16.mxu1 %v2016_v1 }
  0x41   :  { %1543 = vmatpush1.bf16.msra.mxu0 %v2013_v63  ;;  %v2102_v63 = vld [vmem:[#allocation2 + $0x320] ss:$16 sps:$4 sm:$0xff]  }
  0x42   :  { %1544 = vmatprep.subr.bf16.mxu0 %v2021_v2 }
  0x43   :  { %1422 = vmatpush1.bf16.msra.mxu1 %v2018_v5 }
  0x45   :  { %1545 = vmatpush1.bf16.msra.mxu0 %v2019_v6 }
  0xeb   :  { %v124_v9 = vpop.f32.mrb[0].mxu0 }
  0xec   :  { %v125_v10 = vadd.f32 %v124_v9, %v49_v8  ;;  %v1914_v11 = vpop.f32.mrb[1].mxu0  ;;  %v2022_v8 = vld [vmem:[#allocation2 + $0x184] ss:$16 sps:$4 sm:$0xff]   ;;  %v2027_v9 = vld [vmem:[#allocation2 + $0x18c] ss:$16 sps:$4 sm:$0xff]  }
  0xed   :  { %1423 = vmatprep.subr.bf16.mxu1 %v2022_v8  ;;  %v2025_v11 = vld [vmem:[#allocation2 + $0x188] ss:$16 sps:$4 sm:$0xff]   ;;  %1546 = vmatprep.subr.bf16.mxu0 %v2027_v9  ;;  %v2107_v8 = vld [vmem:[#allocation2 + $0x32c] ss:$16 sps:$4 sm:$0xff]  }
  0xee   :  { %v129_v12 = vsel %vm128_vm2, %v125_v10, -inf  ;;  %1547 = vmatpush1.bf16.msra.mxu0 %v2025_v11  ;;  %v2105_v9 = vld [vmem:[#allocation2 + $0x328] ss:$16 sps:$4 sm:$0xff]   ;;  %v2108_v11 = vld [vmem:[#allocation2 + $0x340] ss:$16 sps:$4 sm:$0xff]  }
  0xef   :  { %130 = vmax.xlane.f32.xlu0 %v129_v12  ;;  %v2028_v12 = vld [vmem:[#allocation2 + $0x1a4] ss:$16 sps:$4 sm:$0xff]  }
 0x17c   :  { %v131_v13 = vpop.xlane.xlu0 %130 }
 0x17d   :  { %v132_v14 = vsub.f32 %v125_v10, %v131_v13  ;;  %v2024_v10 = vld [vmem:[#allocation2 + $0x180] ss:$16 sps:$4 sm:$0xff]   ;;  %v2033_v13 = vld [vmem:[#allocation2 + $0x1ac] ss:$16 sps:$4 sm:$0xff]  }
 0x17e   :  { %1424 = vmatpush1.bf16.msra.mxu1 %v2024_v10  ;;  %1548 = vmatprep.subr.bf16.mxu0 %v2033_v13  ;;  %v2110_v10 = vld [vmem:[#allocation2 + $0x344] ss:$16 sps:$4 sm:$0xff]   ;;  %v2111_v13 = vld [vmem:[#allocation2 + $0x348] ss:$16 sps:$4 sm:$0xff]  }
 0x17f   :  { %v133_v15 = vmul.f32 1.442695, %v132_v14  ;;  %v2030_v14 = vld [vmem:[#allocation2 + $0x1a0] ss:$16 sps:$4 sm:$0xff]   ;;  %1425 = vmatprep.subr.bf16.mxu1 %v2028_v12  ;;  %v2113_v12 = vld [vmem:[#allocation2 + $0x34c] ss:$16 sps:$4 sm:$0xff]  }
 0x181   :  { %2244 = vpow2.f32 %v133_v15  ;;  %v2031_v15 = vld [vmem:[#allocation2 + $0x1a8] ss:$16 sps:$4 sm:$0xff]  }
 0x182   :  { %1426 = vmatpush1.bf16.msra.mxu1 %v2030_v14  ;;  %1549 = vmatpush1.bf16.msra.mxu0 %v2031_v15  ;;  %v2116_v14 = vld [vmem:[#allocation2 + $0x364] ss:$16 sps:$4 sm:$0xff]   ;;  %v2114_v15 = vld [vmem:[#allocation2 + $0x360] ss:$16 sps:$4 sm:$0xff]  }
 0x183   :  { %1550 = vmatprep.subr.bf16.mxu0 %v2039_v18  ;;  %v2120_v18 = vld [vmem:[#allocation2 + $0x380] ss:$16 sps:$4 sm:$0xff]  }
 0x186   :  { %1551 = vmatpush1.bf16.msra.mxu0 %v2037_v20  ;;  %v2125_v20 = vld [vmem:[#allocation2 + $0x38c] ss:$16 sps:$4 sm:$0xff]  }
 0x187   :  { %1552 = vmatprep.subr.bf16.mxu0 %v2045_v22  ;;  %v2123_v22 = vld [vmem:[#allocation2 + $0x388] ss:$16 sps:$4 sm:$0xff]  }
 0x18a   :  { %1553 = vmatpush1.bf16.msra.mxu0 %v2043_v24  ;;  %v2131_v24 = vld [vmem:[#allocation2 + $0x3ac] ss:$16 sps:$4 sm:$0xff]  }
 0x18b   :  { %v2385_v16 = vpop.eup %2244  ;;  %1563 = vmatprep.subr.bf16.mxu0 %v2053_v26  ;;  %v202_v26 = vld [vmem:[%s2465_s3 + $0x8] sm:$0xff] }
 0x18c   :  { %v135_v17 = vsel %vm128_vm2, %v2385_v16, 0.0 }
 0x18d   :  { %136 = vadd.xlane.f32.xlu0 %v135_v17  ;;  %v2034_v17 = vld [vmem:[#allocation2 + $0x1c4] ss:$16 sps:$4 sm:$0xff]   ;;  %1555 = vmatmul.mubr.bf16.vlgmr.msra.gmra.mrb[4].mxu0 %v1710_v27 }
 0x18e   :  { %1427 = vmatprep.subr.bf16.mxu1 %v2034_v17  ;;  %1564 = vmatpush1.bf16.msra.mxu0 %v2051_v29  ;;  %v2119_v17 = vld [vmem:[#allocation2 + $0x36c] ss:$16 sps:$4 sm:$0xff]   ;;  %v2132_v29 = vld [vmem:[#allocation2 + $0x3c0] ss:$16 sps:$4 sm:$0xff]  }
 0x18f   :  { %1428 = vmatpush1.bf16.msra.mxu1 %v2036_v19  ;;  %1565 = vmatprep.subr.bf16.mxu0 %v2059_v31  ;;  %v2122_v19 = vld [vmem:[#allocation2 + $0x384] ss:$16 sps:$4 sm:$0xff]  }
 0x190   :  { %1429 = vmatprep.subr.bf16.mxu1 %v2040_v21  ;;  %v2128_v21 = vld [vmem:[#allocation2 + $0x3a4] ss:$16 sps:$4 sm:$0xff]  }
 0x191   :  { %v2140_v31 = vld [vmem:[#allocation2 + $0x3e4] ss:$16 sps:$4 sm:$0xff]  }
 0x192   :  { %1566 = vmatpush1.bf16.msra.mxu0 %v2057_v33  ;;  %v2138_v33 = vld [vmem:[#allocation2 + $0x3e0] ss:$16 sps:$4 sm:$0xff]  }
 0x193   :  { %1430 = vmatpush1.bf16.msra.mxu1 %v2042_v23  ;;  %1567 = vmatprep.subr.bf16.mxu0 %v2065_v35  ;;  %v2126_v23 = vld [vmem:[#allocation2 + $0x3a0] ss:$16 sps:$4 sm:$0xff]   ;;  %v2148_v35 = vld [vmem:[#allocation2 + $0x404] ss:$16 sps:$4 sm:$0xff]  }
 0x194   :  { %1440 = vmatprep.subr.bf16.mxu1 %v2050_v25  ;;  %v2134_v25 = vld [vmem:[#allocation2 + $0x3c4] ss:$16 sps:$4 sm:$0xff]  }
 0x196   :  { %1432 = vmatmul.mubr.bf16.vlgmr.msra.gmra.mrb[0].mxu1 %v1710_v27  ;;  %1568 = vmatpush1.bf16.msra.mxu0 %v2063_v37  ;;  %v2129_v27 = vld [vmem:[#allocation2 + $0x3a8] ss:$16 sps:$4 sm:$0xff]   ;;  %v1712_v37 = vcombine.low %v202_v26, %v202_v26 }
 0x197   :  { %1441 = vmatpush1.bf16.msra.mxu1 %v2048_v28  ;;  %1569 = vmatprep.subr.bf16.mxu0 %v2071_v39  ;;  %v1713_v28 = vcombine.high %v202_v26, %v202_v26  ;;  %v2151_v39 = vld [vmem:[#allocation2 + $0x40c] ss:$16 sps:$4 sm:$0xff]  }
 0x198   :  { %1442 = vmatprep.subr.bf16.mxu1 %v2056_v30  ;;  %v2137_v30 = vld [vmem:[#allocation2 + $0x3cc] ss:$16 sps:$4 sm:$0xff]  }
 0x199   :  { %1472 = vmatprep.mubr.bf16.mxu1 %v1713_v28  ;;  %1595 = vmatprep.mubr.bf16.mxu0 %v1713_v28  ;;  %v2217_v26 = vld [vmem:[#allocation2 + $0x56c] ss:$16 sps:$4 sm:$0xff]   ;;  %v2215_v28 = vld [vmem:[#allocation2 + $0x568] ss:$16 sps:$4 sm:$0xff]  }
 0x19a   :  { %1570 = vmatpush1.bf16.msra.mxu0 %v2069_v41  ;;  %v2149_v41 = vld [vmem:[#allocation2 + $0x408] ss:$16 sps:$4 sm:$0xff]  }
 0x19b   :  { %1443 = vmatpush1.bf16.msra.mxu1 %v2054_v32  ;;  %1571 = vmatprep.subr.bf16.mxu0 %v2077_v43  ;;  %v2135_v32 = vld [vmem:[#allocation2 + $0x3c8] ss:$16 sps:$4 sm:$0xff]   ;;  %v2157_v43 = vld [vmem:[#allocation2 + $0x42c] ss:$16 sps:$4 sm:$0xff]  }
 0x19c   :  { %1444 = vmatprep.subr.bf16.mxu1 %v2062_v34  ;;  %v2143_v34 = vld [vmem:[#allocation2 + $0x3ec] ss:$16 sps:$4 sm:$0xff]  }
 0x19e   :  { %1572 = vmatpush1.bf16.msra.mxu0 %v2075_v45  ;;  %v2155_v45 = vld [vmem:[#allocation2 + $0x428] ss:$16 sps:$4 sm:$0xff]  }
 0x19f   :  { %1445 = vmatpush1.bf16.msra.mxu1 %v2060_v36  ;;  %1573 = vmatprep.subr.bf16.mxu0 %v2083_v47  ;;  %v2141_v36 = vld [vmem:[#allocation2 + $0x3e8] ss:$16 sps:$4 sm:$0xff]   ;;  %v2163_v47 = vld [vmem:[#allocation2 + $0x44c] ss:$16 sps:$4 sm:$0xff]  }
 0x1a0   :  { %1446 = vmatprep.subr.bf16.mxu1 %v2068_v38  ;;  %v2146_v38 = vld [vmem:[#allocation2 + $0x400] ss:$16 sps:$4 sm:$0xff]  }
 0x1a2   :  { %1574 = vmatpush1.bf16.msra.mxu0 %v2081_v49  ;;  %v2161_v49 = vld [vmem:[#allocation2 + $0x448] ss:$16 sps:$4 sm:$0xff]  }
 0x1a3   :  { %1447 = vmatpush1.bf16.msra.mxu1 %v2066_v40  ;;  %1575 = vmatprep.subr.bf16.mxu0 %v2089_v51  ;;  %v2154_v40 = vld [vmem:[#allocation2 + $0x424] ss:$16 sps:$4 sm:$0xff]   ;;  %v2164_v51 = vld [vmem:[#allocation2 + $0x460] ss:$16 sps:$4 sm:$0xff]  }
 0x1a4   :  { %1448 = vmatprep.subr.bf16.mxu1 %v2074_v42  ;;  %v2152_v42 = vld [vmem:[#allocation2 + $0x420] ss:$16 sps:$4 sm:$0xff]  }
 0x1a6   :  { %1576 = vmatpush1.bf16.msra.mxu0 %v2087_v53 }
 0x1a7   :  { %1449 = vmatpush1.bf16.msra.mxu1 %v2072_v44  ;;  %1577 = vmatprep.subr.bf16.mxu0 %v2095_v55  ;;  %v2160_v44 = vld [vmem:[#allocation2 + $0x444] ss:$16 sps:$4 sm:$0xff]   ;;  %v2167_v55 = vld [vmem:[#allocation2 + $0x468] ss:$16 sps:$4 sm:$0xff]  }
 0x1a8   :  { %1450 = vmatprep.subr.bf16.mxu1 %v2080_v46  ;;  %v2158_v46 = vld [vmem:[#allocation2 + $0x440] ss:$16 sps:$4 sm:$0xff]  }
 0x1aa   :  { %1578 = vmatpush1.bf16.msra.mxu0 %v2093_v57  ;;  %v2175_v57 = vld [vmem:[#allocation2 + $0x48c] ss:$16 sps:$4 sm:$0xff]  }
 0x1ab   :  { %1451 = vmatpush1.bf16.msra.mxu1 %v2078_v48  ;;  %1579 = vmatprep.subr.bf16.mxu0 %v2101_v59  ;;  %v2166_v48 = vld [vmem:[#allocation2 + $0x464] ss:$16 sps:$4 sm:$0xff]   ;;  %v2173_v59 = vld [vmem:[#allocation2 + $0x488] ss:$16 sps:$4 sm:$0xff]  }
 0x1ac   :  { %1452 = vmatprep.subr.bf16.mxu1 %v2086_v50  ;;  %v2409_v50 = vld [vmem:[%s2465_s3 + $0x10] sm:$0xff] }
 0x1ad   :  { %v1715_v53 = vcombine.high %v2409_v50, %v2409_v50 }
 0x1ae   :  { %1580 = vmatpush1.bf16.msra.mxu0 %v2099_v61  ;;  %v2181_v61 = vld [vmem:[#allocation2 + $0x4ac] ss:$16 sps:$4 sm:$0xff]  }
 0x1af   :  { %1453 = vmatpush1.bf16.msra.mxu1 %v2084_v52  ;;  %1581 = vmatprep.subr.bf16.mxu0 %v2107_v8  ;;  %v2169_v52 = vld [vmem:[#allocation2 + $0x46c] ss:$16 sps:$4 sm:$0xff]   ;;  %v2185_v8 = vld [vmem:[#allocation2 + $0x4c8] ss:$16 sps:$4 sm:$0xff]  }
 0x1b0   :  { %1454 = vmatprep.subr.bf16.mxu1 %v2092_v54  ;;  %v2172_v54 = vld [vmem:[#allocation2 + $0x484] ss:$16 sps:$4 sm:$0xff]  }
 0x1b2   :  { %1582 = vmatpush1.bf16.msra.mxu0 %v2105_v9  ;;  %v2188_v9 = vld [vmem:[#allocation2 + $0x4e0] ss:$16 sps:$4 sm:$0xff]  }
 0x1b3   :  { %1455 = vmatpush1.bf16.msra.mxu1 %v2090_v56  ;;  %1583 = vmatprep.subr.bf16.mxu0 %v2113_v12  ;;  %v2170_v56 = vld [vmem:[#allocation2 + $0x480] ss:$16 sps:$4 sm:$0xff]   ;;  %v2191_v12 = vld [vmem:[#allocation2 + $0x4e8] ss:$16 sps:$4 sm:$0xff]  }
 0x1b4   :  { %1456 = vmatprep.subr.bf16.mxu1 %v2098_v58  ;;  %v2178_v58 = vld [vmem:[#allocation2 + $0x4a4] ss:$16 sps:$4 sm:$0xff]  }
 0x1b6   :  { %1584 = vmatpush1.bf16.msra.mxu0 %v2111_v13  ;;  %v2194_v13 = vld [vmem:[#allocation2 + $0x500] ss:$16 sps:$4 sm:$0xff]  }
 0x1b7   :  { %1457 = vmatpush1.bf16.msra.mxu1 %v2096_v60  ;;  %1585 = vmatprep.subr.bf16.mxu0 %v2119_v17  ;;  %v2176_v60 = vld [vmem:[#allocation2 + $0x4a0] ss:$16 sps:$4 sm:$0xff]  }
 0x1b8   :  { %1458 = vmatprep.subr.bf16.mxu1 %v2104_v62  ;;  %v2184_v62 = vld [vmem:[#allocation2 + $0x4c4] ss:$16 sps:$4 sm:$0xff]   ;;  %v2200_v17 = vld [vmem:[#allocation2 + $0x520] ss:$16 sps:$4 sm:$0xff]  }
 0x1bb   :  { %1459 = vmatpush1.bf16.msra.mxu1 %v2102_v63  ;;  %v2179_v63 = vld [vmem:[#allocation2 + $0x4a8] ss:$16 sps:$4 sm:$0xff]  }
 0x1bc   :  { %1460 = vmatprep.subr.bf16.mxu1 %v2110_v10  ;;  %v2193_v10 = vld [vmem:[#allocation2 + $0x4ec] ss:$16 sps:$4 sm:$0xff]  }
 0x1bf   :  { %1461 = vmatpush1.bf16.msra.mxu1 %v2108_v11  ;;  %v2196_v11 = vld [vmem:[#allocation2 + $0x504] ss:$16 sps:$4 sm:$0xff]  }
 0x1c0   :  { %1462 = vmatprep.subr.bf16.mxu1 %v2116_v14  ;;  %v2199_v14 = vld [vmem:[#allocation2 + $0x50c] ss:$16 sps:$4 sm:$0xff]  }
 0x1c3   :  { %1463 = vmatpush1.bf16.msra.mxu1 %v2114_v15  ;;  %v2202_v15 = vld [vmem:[#allocation2 + $0x524] ss:$16 sps:$4 sm:$0xff]  }
 0x1c4   :  { %1464 = vmatprep.subr.bf16.mxu1 %v2122_v19  ;;  %v2208_v19 = vld [vmem:[#allocation2 + $0x544] ss:$16 sps:$4 sm:$0xff]  }
 0x1c7   :  { %1465 = vmatpush1.bf16.msra.mxu1 %v2120_v18  ;;  %v2205_v18 = vld [vmem:[#allocation2 + $0x52c] ss:$16 sps:$4 sm:$0xff]  }
 0x1c8   :  { %1466 = vmatprep.subr.bf16.mxu1 %v2128_v21  ;;  %v2206_v21 = vld [vmem:[#allocation2 + $0x540] ss:$16 sps:$4 sm:$0xff]  }
 0x1cb   :  { %1467 = vmatpush1.bf16.msra.mxu1 %v2126_v23  ;;  %v2214_v23 = vld [vmem:[#allocation2 + $0x564] ss:$16 sps:$4 sm:$0xff]  }
 0x1cc   :  { %1468 = vmatprep.subr.bf16.mxu1 %v2134_v25  ;;  %v2212_v25 = vld [vmem:[#allocation2 + $0x560] ss:$16 sps:$4 sm:$0xff]  }
 0x1cf   :  { %1469 = vmatpush1.bf16.msra.mxu1 %v2132_v29  ;;  %v2218_v29 = vld [vmem:[#allocation2 + $0x580] ss:$16 sps:$4 sm:$0xff]  }
 0x1d0   :  { %1470 = vmatprep.subr.bf16.mxu1 %v2140_v31  ;;  %v2226_v31 = vld [vmem:[#allocation2 + $0x5a4] ss:$16 sps:$4 sm:$0xff]  }
 0x1d3   :  { %1471 = vmatpush1.bf16.msra.mxu1 %v2138_v33  ;;  %v2224_v33 = vld [vmem:[#allocation2 + $0x5a0] ss:$16 sps:$4 sm:$0xff]  }
 0x1d4   :  { %1481 = vmatprep.subr.bf16.mxu1 %v2148_v35  ;;  %v2232_v35 = vld [vmem:[#allocation2 + $0x5c4] ss:$16 sps:$4 sm:$0xff]  }
 0x1d6   :  { %1473 = vmatmul.mubr.bf16.vlgmr.msra.gmra.mrb[0].mxu1 %v1712_v37 }
 0x1d7   :  { %1482 = vmatpush1.bf16.msra.mxu1 %v2146_v38  ;;  %1513 = vmatprep.mubr.bf16.mxu1 %v1715_v53  ;;  %v2235_v38 = vld [vmem:[#allocation2 + $0x5cc] ss:$16 sps:$4 sm:$0xff]  }
 0x1d8   :  { %1483 = vmatprep.subr.bf16.mxu1 %v2154_v40  ;;  %v2233_v40 = vld [vmem:[#allocation2 + $0x5c8] ss:$16 sps:$4 sm:$0xff]  }
 0x1db   :  { %1484 = vmatpush1.bf16.msra.mxu1 %v2152_v42  ;;  %v2243_v42 = vld [vmem:[#allocation2 + $0x5ec] ss:$16 sps:$4 sm:$0xff]  }
 0x1dc   :  { %1485 = vmatprep.subr.bf16.mxu1 %v2160_v44  ;;  %v2241_v44 = vld [vmem:[#allocation2 + $0x5e8] ss:$16 sps:$4 sm:$0xff]  }
 0x1df   :  { %1486 = vmatpush1.bf16.msra.mxu1 %v2158_v46 }
 0x1e0   :  { %1487 = vmatprep.subr.bf16.mxu1 %v2166_v48 }
 0x1e3   :  { %1488 = vmatpush1.bf16.msra.mxu1 %v2164_v51 }
 0x1e4   :  { %1489 = vmatprep.subr.bf16.mxu1 %v2172_v54 }
 0x1e7   :  { %1490 = vmatpush1.bf16.msra.mxu1 %v2170_v56 }
 0x1e8   :  { %1491 = vmatprep.subr.bf16.mxu1 %v2178_v58 }
 0x1eb   :  { %1492 = vmatpush1.bf16.msra.mxu1 %v2176_v60 }
 0x1ec   :  { %1493 = vmatprep.subr.bf16.mxu1 %v2184_v62 }
 0x21a   :  { %v137_v1 = vpop.xlane.xlu0 %136 }
 0x21b   :  { %2246 = vrcp.f32 %v137_v1  ;;  %v2182_v1 = vld [vmem:[#allocation2 + $0x4c0] ss:$16 sps:$4 sm:$0xff]  }
 0x21c   :  { %1494 = vmatpush1.bf16.msra.mxu1 %v2182_v1 }
 0x225   :  { %v2247_v2 = vpop.eup %2246 }
 0x226   :  { %v2399_v5 = vmul.f32 %v2247_v2, %v2385_v16  ;;  %v2117_v16 = vld [vmem:[#allocation2 + $0x368] ss:$16 sps:$4 sm:$0xff]   ;;  %v2187_v2 = vld [vmem:[#allocation2 + $0x4cc] ss:$16 sps:$4 sm:$0xff]  }
 0x227   :  { %1586 = vmatpush1.bf16.msra.mxu0 %v2117_v16  ;;  %v2197_v16 = vld [vmem:[#allocation2 + $0x508] ss:$16 sps:$4 sm:$0xff]  }
 0x228   :  { %v140_v6 = vsel %vm128_vm2, %v2399_v5, -inf  ;;  %1587 = vmatprep.subr.bf16.mxu0 %v2125_v20  ;;  %v2203_v20 = vld [vmem:[#allocation2 + $0x528] ss:$16 sps:$4 sm:$0xff]  }
 0x229   :  { %141 = vmax.xlane.f32.xlu1 %v140_v6  ;;  %v2190_v6 = vld [vmem:[#allocation2 + $0x4e4] ss:$16 sps:$4 sm:$0xff]  }
 0x22a   :  { %1495 = vmatprep.subr.bf16.mxu1 %v2190_v6 }
 0x22b   :  { %1588 = vmatpush1.bf16.msra.mxu0 %v2123_v22  ;;  %1496 = vmatpush1.bf16.msra.mxu1 %v2188_v9  ;;  %v2211_v22 = vld [vmem:[#allocation2 + $0x54c] ss:$16 sps:$4 sm:$0xff]  }
 0x22c   :  { %1589 = vmatprep.subr.bf16.mxu0 %v2131_v24  ;;  %1497 = vmatprep.subr.bf16.mxu1 %v2196_v11  ;;  %v2209_v24 = vld [vmem:[#allocation2 + $0x548] ss:$16 sps:$4 sm:$0xff]  }
 0x22f   :  { %1590 = vmatpush1.bf16.msra.mxu0 %v2129_v27  ;;  %1498 = vmatpush1.bf16.msra.mxu1 %v2194_v13  ;;  %v2220_v27 = vld [vmem:[#allocation2 + $0x584] ss:$16 sps:$4 sm:$0xff]   ;;  %v2307_v13 = vmov 2  }
 0x230   :  { %1591 = vmatprep.subr.bf16.mxu0 %v2137_v30  ;;  %1499 = vmatprep.subr.bf16.mxu1 %v2202_v15  ;;  %v2223_v30 = vld [vmem:[#allocation2 + $0x58c] ss:$16 sps:$4 sm:$0xff]   ;;  %v1708_v15 = vsel %vm167_vm7, 1.0, %v2303_v0 }
 0x233   :  { %1592 = vmatpush1.bf16.msra.mxu0 %v2135_v32  ;;  %1500 = vmatpush1.bf16.msra.mxu1 %v2200_v17  ;;  %v2221_v32 = vld [vmem:[#allocation2 + $0x588] ss:$16 sps:$4 sm:$0xff]   ;;  %v180_v17 = vmul.f32 %v1708_v15, %v2399_v5 }
 0x234   :  { %1593 = vmatprep.subr.bf16.mxu0 %v2143_v34  ;;  %1501 = vmatprep.subr.bf16.mxu1 %v2208_v19  ;;  %v2229_v34 = vld [vmem:[#allocation2 + $0x5ac] ss:$16 sps:$4 sm:$0xff]  }
 0x235   :  { %v181_v19 = vsel %vm128_vm2, %v180_v17, 0.0 }
 0x237   :  { %1594 = vmatpush1.bf16.msra.mxu0 %v2141_v36  ;;  %1502 = vmatpush1.bf16.msra.mxu1 %v2206_v21  ;;  %v2227_v36 = vld [vmem:[#allocation2 + $0x5a8] ss:$16 sps:$4 sm:$0xff]   ;;  %v182_v21 = vrot.slane %v181_v19, 4 }
 0x238   :  { %1604 = vmatprep.subr.bf16.mxu0 %v2151_v39  ;;  %1503 = vmatprep.subr.bf16.mxu1 %v2214_v23  ;;  %v2238_v39 = vld [vmem:[#allocation2 + $0x5e4] ss:$16 sps:$4 sm:$0xff]  }
 0x23a   :  { %1596 = vmatmul.mubr.bf16.vlgmr.msra.gmra.mrb[4].mxu0 %v1712_v37  ;;  %v2230_v37 = vld [vmem:[#allocation2 + $0x5c0] ss:$16 sps:$4 sm:$0xff]  }
 0x23b   :  { %1605 = vmatpush1.bf16.msra.mxu0 %v2149_v41  ;;  %1636 = vmatprep.mubr.bf16.mxu0 %v1715_v53  ;;  %v2236_v41 = vld [vmem:[#allocation2 + $0x5e0] ss:$16 sps:$4 sm:$0xff]  }
 0x23c   :  { %1606 = vmatprep.subr.bf16.mxu0 %v2157_v43  ;;  %1504 = vmatpush1.bf16.msra.mxu1 %v2212_v25  ;;  %v1714_v43 = vcombine.low %v2409_v50, %v2409_v50  ;;  %v183_v25 = vadd.f32 %v182_v21, %v181_v19 }
 0x23d   :  { %1505 = vmatprep.subr.bf16.mxu1 %v2220_v27 }
 0x23f   :  { %1607 = vmatpush1.bf16.msra.mxu0 %v2155_v45  ;;  %v2416_v45 = vand.u32 127, %v46_v3  ;;  %v2306_v3 = vmov 0  }
 0x240   :  { %1608 = vmatprep.subr.bf16.mxu0 %v2163_v47  ;;  %1506 = vmatpush1.bf16.msra.mxu1 %v2218_v29 }
 0x241   :  { %1507 = vmatprep.subr.bf16.mxu1 %v2226_v31  ;;  %1945 = vset.pattern.permute.xlu1 %v2306_v3  ;;  %vm1669_vm8 = vcmp.lt.s32.totalorder %v2416_v45, 10 }
 0x243   :  { %1609 = vmatpush1.bf16.msra.mxu0 %v2161_v49 }
 0x244   :  { %1610 = vmatprep.subr.bf16.mxu0 %v2169_v52  ;;  %1508 = vmatpush1.bf16.msra.mxu1 %v2224_v33 }
 0x245   :  { %1509 = vmatprep.subr.bf16.mxu1 %v2232_v35  ;;  %v412_v35 = vsub.s32 3, %v2376_v4 }
 0x247   :  { %1611 = vmatpush1.bf16.msra.mxu0 %v2167_v55  ;;  %v2305_v55 = vmov 1  }
 0x248   :  { %1612 = vmatprep.subr.bf16.mxu0 %v2175_v57  ;;  %1510 = vmatpush1.bf16.msra.mxu1 %v2230_v37 }
 0x249   :  { %1511 = vmatprep.subr.bf16.mxu1 %v2238_v39  ;;  %1946 = vset.pattern.permute.xlu0 %v2305_v55 }
 0x24b   :  { %1613 = vmatpush1.bf16.msra.mxu0 %v2173_v59 }
 0x24c   :  { %1614 = vmatprep.subr.bf16.mxu0 %v2181_v61  ;;  %1512 = vmatpush1.bf16.msra.mxu1 %v2236_v41 }
 0x24f   :  { %1615 = vmatpush1.bf16.msra.mxu0 %v2179_v63  ;;  %1514 = vmatmul.mubr.bf16.vlgmr.msra.gmra.mrb[0].mxu1 %v1714_v43 }
 0x250   :  { %1616 = vmatprep.subr.bf16.mxu0 %v2187_v2 }
 0x253   :  { %1617 = vmatpush1.bf16.msra.mxu0 %v2185_v8 }
 0x254   :  { %1618 = vmatprep.subr.bf16.mxu0 %v2193_v10 }
 0x257   :  { %1619 = vmatpush1.bf16.msra.mxu0 %v2191_v12 }
 0x258   :  { %1620 = vmatprep.subr.bf16.mxu0 %v2199_v14  ;;  %v2308_v14 = vmov 3  }
 0x25b   :  { %1621 = vmatpush1.bf16.msra.mxu0 %v2197_v16 }
 0x25c   :  { %1622 = vmatprep.subr.bf16.mxu0 %v2205_v18 }
 0x25f   :  { %1623 = vmatpush1.bf16.msra.mxu0 %v2203_v20 }
 0x260   :  { %1624 = vmatprep.subr.bf16.mxu0 %v2211_v22  ;;  %v404_v22 = vsub.s32 1, %v2376_v4 }
 0x263   :  { %1625 = vmatpush1.bf16.msra.mxu0 %v2209_v24  ;;  %v396_v24 = vld [vmem:[%s2467_s5] sm:$0xf]  ;;  %s2309_s5 = smov [#allocation5]  }
 0x264   :  { %1626 = vmatprep.subr.bf16.mxu0 %v2217_v26  ;;  %v405_v26 = vrot.slane %v396_v24, %v404_v22  ;;  %s1692_s29 = sshll.u32 %s2309_s5, 4  ;;  %s1693_s29 = int_to_ptr.vmem [resolvable:$true] %s1692_s29 }
 0x265   :  { %s2274_s30 = scalar_lea.vmem %s1693_s29, 16  ;;  %s2278_s9 = scalar_lea.vmem %s1693_s29, 32 }
 0x266   :  { %p2275_p8 = scmp.ne.s32.totalorder %s1693_s29, %s2274_s30  ;;  %p2279_p9 = scmp.lt.s32.totalorder %s1693_s29, %s1693_s29 }
 0x267   :  { %1627 = vmatpush1.bf16.msra.mxu0 %v2215_v28  ;;  %v184_v28 = vrot.slane %v183_v25, 2  ;;  %p2280_p10 = scmp.lt.s32.totalorder %s2278_s9, %s2274_s30 }
 0x268   :  { %1628 = vmatprep.subr.bf16.mxu0 %v2223_v30 }
 0x269   :  { %p2281_p11 = por %p2280_p10, %p2279_p9 }
 0x26b   :  { %1629 = vmatpush1.bf16.msra.mxu0 %v2221_v32  ;;  %p2282_p12 = pnand %p2281_p11, %p2275_p8 }
 0x26c   :  { %1630 = vmatprep.subr.bf16.mxu0 %v2229_v34 }
 0x26f   :  { %1631 = vmatpush1.bf16.msra.mxu0 %v2227_v36 }
 0x270   :  { %1632 = vmatprep.subr.bf16.mxu0 %v2235_v38  ;;  %v185_v38 = vadd.f32 %v184_v28, %v183_v25 }
 0x273   :  { %1633 = vmatpush1.bf16.msra.mxu0 %v2233_v40 }
 0x274   :  { %1634 = vmatprep.subr.bf16.mxu0 %v2243_v42 }
 0x277   :  { %1635 = vmatpush1.bf16.msra.mxu0 %v2241_v44 }
 0x27a   :  { %1637 = vmatmul.mubr.bf16.vlgmr.msra.gmra.mrb[4].mxu0 %v1714_v43  ;;  %v186_v43 = vrot.slane %v185_v38, 1 }
 0x2b6   :  { %v142_v46 = vpop.xlane.xlu1 %141 }
 0x2b7   :  { %vm145_vm3 = vcmp.eq.f32.partialorder %v2399_v5, %v142_v46  ;;  %v408_v5 = vsub.s32 2, %v2376_v4 }
 0x2b8   :  { %v146_v47 = vsel %vm145_vm3, %v2416_v45, 4 }
 0x2b9   :  { %v147_v48 = vsel %vm128_vm2, %v146_v47, 2147483647  ;;  %v409_v32 = vrot.slane %v396_v24, %v408_v5 }
 0x2ba   :  { %v149_v49 = vshra.s32 %v147_v48, 16  ;;  %v148_v50 = vand.u32 65535, %v147_v48 }
 0x2bc   :  { %v151_v51 = vcvt.s32.f32 %v149_v49  ;;  %v150_v53 = vcvt.s32.f32 %v148_v50  ;;  %v187_v49 = vadd.f32 %v186_v43, %v185_v38 }
 0x2be   :  { %152 = vmin.xlane.f32.xlu1 %v151_v51 }
 0x322   :  { %v1515_v56 = vpop.f32.mrb[0].mxu1 }
 0x323   :  { %v1517_v57 = vpop.f32.mrb[1].mxu1 }
 0x324   :  { %v1519_v58 = vpop.f32.mrb[2].mxu1  ;;  %v1916_v30 = vadd.f32 %v1517_v57, %v405_v26 }
 0x325   :  { %v1520_v59 = vpop.f32.mrb[3].mxu1 }
 0x34b   :  { %v153_v52 = vpop.xlane.xlu1 %152 }
 0x34c   :  { %vm154_vm4 = vcmp.eq.f32.partialorder %v151_v51, %v153_v52  ;;  %v159_v1 = vcvt.f32.s32 %v153_v52 }
 0x34d   :  { %v155_v54 = vsel %vm154_vm4, %v150_v53, inf  ;;  %v1638_v60 = vpop.f32.mrb[4].mxu0  ;;  %v188_v53 = vmul.f32 0.5, %v187_v49 }
 0x34e   :  { %156 = vmin.xlane.f32.xlu0 %v155_v54  ;;  %v1640_v61 = vpop.f32.mrb[5].mxu0  ;;  %v160_v6 = vshll.u32 %v159_v1, 16  ;;  %v1917_v41 = vadd.f32 %v1638_v60, %v409_v32 }
 0x34f   :  { %v1642_v62 = vpop.f32.mrb[6].mxu0 }
 0x350   :  { %v1643_v63 = vpop.f32.mrb[7].mxu0 }
 0x3db   :  { %v157_v2 = vpop.xlane.xlu0 %156 }
 0x3dc   :  { %v158_v8 = vcvt.f32.s32 %v157_v2 }
 0x3de   :  { %v161_v9 = vadd.s32 %v160_v6, %v158_v8 }
 0x3e0   :  { %vm162_vm5 = vcmp.eq.s32.totalorder %v2416_v45, %v161_v9 }
 0x3e1   :  { %v1707_v10 = vsel %vm162_vm5, 1.0, %v2303_v0 }
 0x3e2   :  { %v196_v11 = vmul.f32 %v1707_v10, %v142_v46  ;;  %v170_v16 = vmul.f32 %v1708_v15, %v1707_v10 }
 0x3e4   :  { %vm197_vm6 = vcmp.ne.f32.partialorder %v196_v11, 0.0  ;;  %1652 = vperm.xlu0 %1946, %v196_v11   ;;  %1647 = vperm.xlu1 %1945, %v196_v11   ;;  %v171_v18 = vsel %vm128_vm2, %v170_v16, 0.0 }
 0x3e5   :  { %v1709_v12 = vsel %vm197_vm6, 1.0, %v2303_v0  ;;  %v172_v20 = vrot.slane %v171_v18, 4  ;;  %v401_v0 = vrot.slane %v396_v24, %v48_v7  ;;  %v413_v7 = vrot.slane %v396_v24, %v412_v35 }
 0x3e6   :  { %200 = vst.msk [vmem:[%s2469_s7] sm:$0xff] %vm128_vm2, %v1709_v12 }
 0x3e7   :  { %v173_v23 = vadd.f32 %v172_v20, %v171_v18  ;;  %v1915_v29 = vadd.f32 %v1515_v56, %v401_v0  ;;  %v1918_v48 = vadd.f32 %v1640_v61, %v413_v7 }
 0x3e8   :  { %1947 = vset.pattern.permute.xlu1 %v2307_v13  ;;  %1949 = vset.pattern.permute.xlu0 %v2308_v14 }
 0x3e9   :  { %1658 = vperm.xlu1 %1947, %v196_v11   ;;  %v174_v27 = vrot.slane %v173_v23, 2 }
 0x3eb   :  { %v175_v31 = vadd.f32 %v174_v27, %v173_v23 }
 0x3ed   :  { %1948 = vset.pattern.permute.xlu1 %v2308_v14  ;;  %v176_v40 = vrot.slane %v175_v31, 1 }
 0x3ee   :  { %1664 = vperm.xlu1 %1948, %v196_v11  }
 0x3ef   :  { %v177_v46 = vadd.f32 %v176_v40, %v175_v31 }
 0x3f1   :  { %v179_v52 = vmul.f32 0.5, %v177_v46 }
 0x3f3   :  { %v189_v55 = vmul.f32 %v188_v53, %v179_v52 }
 0x3f5   :  { %v190_v3 = vsel %vm128_vm2, %v189_v55, 0.0 }
 0x463   :  { %v1653_v33 = vpop.permute.xlu0 %1652  ;;  %v1648_v34 = vpop.permute.xlu1 %1647 }
 0x464   :  { %v1655_v36 = vmul.f32 %v1916_v30, %v1653_v33  ;;  %v1650_v37 = vmul.f32 %v1915_v29, %v1648_v34 }
 0x466   :  { %v1656_v39 = vadd.f32 %v1655_v36, %v1650_v37 }
 0x468   :  { %v1659_v42 = vpop.permute.xlu1 %1658 }
 0x469   :  { %v1661_v44 = vmul.f32 %v1917_v41, %v1659_v42 }
 0x46b   :  { %v1662_v47 = vadd.f32 %v1661_v44, %v1656_v39 }
 0x46d   :  { %v1665_v51 = vpop.permute.xlu1 %1664 }
 0x46e   :  { %v1667_v50 = vmul.f32 %v1918_v48, %v1665_v51 }
 0x470   :  { %v1668_v4 = vadd.f32 %v1667_v50, %v1662_v47 }
 0x472   :  { %v1670_v54 = vsel %vm1669_vm8, %v1668_v4, -inf }
 0x473   :  { %1671 = vmax.xlane.f32.xlu1 %v1670_v54 }
 0x477   :  { %191 = vadd.xlane.f32.xlu1 %v190_v3 }
 0x500   :  { %v1672_v56 = vpop.xlane.xlu1 %1671 }
 0x501   :  { %v1673_v57 = vsub.f32 %v1670_v54, %v1672_v56 }
 0x503   :  { %v1674_v58 = vmul.f32 1.442695, %v1673_v57 }
 0x504   :  { %v192_v59 = vpop.xlane.xlu1 %191 }
 0x505   :  { %2248 = vpow2.f32 %v1674_v58  ;;  %v193_v60 = vmul.f32 4.0, %v192_v59 }
 0x507   :  { %195 = vst.msk [vmem:[#allocation5] sm:$0x1] %vm194_vm9, %v193_v60 }
 0x50f   :  { %v2249_v61 = vpop.eup %2248 }
 0x510   :  { %v1676_v62 = vsel %vm1669_vm8, %v2249_v61, 0.0 }
 0x511   :  { %1677 = vadd.xlane.f32.xlu0 %v1676_v62 }
 0x512   :  { %2285 = shalt.err (!%p2282_p12)
}
 0x513   :  { %s2286_s12 = scalar_lea.hbm %s2470_s8, 16 }
 0x514   :  { %p2287_p13 = scmp.ne.s32.totalorder %s2470_s8, %s2286_s12  ;;  %p2290_p0 = scmp.lt.u32.totalorder %s2286_s12, %s2470_s8 }
 0x516   :  { %p2292_p1 = pnand %p2290_p0, %p2287_p13 }
 0x518   :  { %2295 = shalt.err (!%p2292_p1)
}
 0x519   :  { %1695 = dma.vmem_to_hbm [thread:$0]  %s1693_s29, 16, %s2470_s8, [#allocation4]  }
 0x59e   :  { %v1678_v45 = vpop.xlane.xlu0 %1677 }
 0x59f   :  { %2250 = vrcp.f32 %v1678_v45 }
 0x5a9   :  { %v2251_v63 = vpop.eup %2250 }
 0x5aa   :  { %v1680_v1 = vmul.f32 %v2251_v63, %v1676_v62 }
 0x5ac   :  { %1681 = vst [vmem:[%s2468_s6] sm:$0xff] %v1680_v1 }
 0x5ad   :  { %2298 = dma.done.wait [#allocation4], 16  }
 0x5ae   :  { %2299 = vsyncadd [#allocation4], 4294967280 }
 0x5af   :  { %1703 = vsyncpa [#allocation3], 1 }
 0x5b0   :  { %1704 = vsyncpa [#allocation4], 1 }

</bundles_post_ra>
